<compile_context>
chip_gen: v6e
topology: v6e:2x2x1
jax: 0.10.0
libtpu: 0.0.40
codegen_flags: <defaults>
</compile_context>

<pallas_src>
import functools
import math

import jax
import jax.numpy as jnp
from jax.experimental import pallas as pl
from jax.experimental.pallas import tpu as pltpu

LANE = 128
_SUB = 16                         # sublane rounding (safe for bf16 packing)


def _round_up(n, m):
    return ((n + m - 1) // m) * m


# --------------------------- per-generation tuning ---------------------------

@functools.lru_cache(maxsize=None)
def _vmem_limit():
    cap = 64 * 1024 * 1024                       # conservative default (v7x)
    try:
        cap = int(pltpu.get_tpu_info().vmem_capacity_bytes)
    except Exception:
        pass
    # ~48 MiB on v7x (64 MiB physical), ~96 MiB on v5e/v6e (128 MiB physical)
    return max(32 * 1024 * 1024, min(cap * 3 // 4, 100 * 1024 * 1024))


def _def_tm():
    return 1024 if _vmem_limit() >= 80 * 1024 * 1024 else 512


@functools.lru_cache(maxsize=None)
def _buffered_ok():
    """Probe once whether BlockSpec(pipeline_mode=pl.Buffered(1)) is supported."""
    try:
        spec = pl.BlockSpec((8, 128), lambda i: (0, 0),
                            pipeline_mode=pl.Buffered(buffer_count=1))

        def _k(a_ref, o_ref):
            o_ref[...] = a_ref[...] + 1.0

        y = pl.pallas_call(
            _k,
            out_shape=jax.ShapeDtypeStruct((8, 128), jnp.float32),
            grid=(1,),
            in_specs=[spec],
            out_specs=pl.BlockSpec((8, 128), lambda i: (0, 0)),
        )(jnp.zeros((8, 128), jnp.float32))
        jax.block_until_ready(y)
        return True
    except Exception:
        return False


def _const_spec(shape, index_map):
    """Spec for a grid-constant operand: single-buffered (no wasted VMEM)."""
    if _buffered_ok():
        return pl.BlockSpec(shape, index_map,
                            pipeline_mode=pl.Buffered(buffer_count=1))
    return pl.BlockSpec(shape, index_map)


def _mosaic(n_axes):
    return pltpu.CompilerParams(dimension_semantics=("parallel",) * n_axes,
                                vmem_limit_bytes=_vmem_limit())


# ------------------------------- Pallas kernels -------------------------------

def _matmul_bias_act_kernel(x_ref, w_ref, bias_ref, o_ref, *, apply_relu):
    """out = maybe_relu(x @ w + bias); bf16 MXU operands, f32 accumulation."""
    acc = jnp.dot(x_ref[...].astype(jnp.bfloat16),
                  w_ref[...].astype(jnp.bfloat16),
                  preferred_element_type=jnp.float32)
    out = acc + bias_ref[...]
    if apply_relu:
        out = jnp.maximum(out, 0.0)
    o_ref[...] = out.astype(o_ref.dtype)


def _dual_matmul_bias_relu_kernel(a_ref, wa_ref, b_ref, wb_ref, bias_ref, o_ref):
    """out = relu(a @ wa + b @ wb + bias): conv3+bn3 fused with projection shortcut."""
    acc = jnp.dot(a_ref[...].astype(jnp.bfloat16),
                  wa_ref[...].astype(jnp.bfloat16),
                  preferred_element_type=jnp.float32)
    acc = acc + jnp.dot(b_ref[...].astype(jnp.bfloat16),
                        wb_ref[...].astype(jnp.bfloat16),
                        preferred_element_type=jnp.float32)
    o_ref[...] = jnp.maximum(acc + bias_ref[...], 0.0).astype(o_ref.dtype)


def _matmul_bias_add_relu_kernel(a_ref, wa_ref, bias_ref, res_ref, o_ref):
    """out = relu(a @ wa + bias + residual): conv3+bn3 fused with identity shortcut."""
    acc = jnp.dot(a_ref[...].astype(jnp.bfloat16),
                  wa_ref[...].astype(jnp.bfloat16),
                  preferred_element_type=jnp.float32)
    out = acc + bias_ref[...] + res_ref[...].astype(jnp.float32)
    o_ref[...] = jnp.maximum(out, 0.0).astype(o_ref.dtype)


def _conv3x3_taps_kernel(x_ref, w_ref, bias_ref, o_ref, *, starts, C):
    """Direct 3x3 conv on one image.

    x_ref : (Lx, C)     flattened slab (padded image, or 4 stacked parity
                        sub-images for stride 2).
    w_ref : (9*C, Cout) tap-major ((dy, dx, c) order) packed weights, BN folded.
    o_ref : (L, Cout)   output rows r = ho*Wrow + wo; columns wo >= Wo are junk
                        and are sliced off by the caller.
    starts: 9 static row offsets (one per tap) into x_ref.

    Taps are grouped by dy into 3 dots of K=3C (better MXU depth on v6e/v7x and
    fewer accumulator read-modify-write passes than 9 separate K=C dots).
    """
    L = o_ref.shape[0]
    acc = None
    for g in range(3):
        lhs = jnp.concatenate(
            [x_ref[s:s + L, :].astype(jnp.bfloat16)
             for s in starts[3 * g:3 * g + 3]],
            axis=-1)
        part = jnp.dot(lhs,
                       w_ref[3 * g * C:3 * (g + 1) * C, :].astype(jnp.bfloat16),
                       preferred_element_type=jnp.float32)
        acc = part if acc is None else acc + part
    o_ref[...] = jnp.maximum(acc + bias_ref[...], 0.0).astype(o_ref.dtype)


# ------------------------------- call wrappers --------------------------------

def _mtile(M, tm):
    # >= 2 grid steps when possible (v7x megacore), sublane-multiple tiles.
    tm_eff = int(min(tm, max(_SUB, _round_up((M + 1) // 2, _SUB))))
    return tm_eff, _round_up(M, tm_eff)


def _ntile(Nc):
    if Nc > 1024:
        for tn in (1024, 512, 256, 128):
            if Nc % tn == 0:
                return tn
    return Nc


def _pad_rows(a, m_pad):
    return a if a.shape[0] == m_pad else jnp.pad(a, ((0, m_pad - a.shape[0]), (0, 0)))


def fused_matmul_bias(x, w, bias, *, apply_relu, out_dtype, tm=None):
    """(M,K)@(K,N) + bias (+ReLU); lane-dense N, bf16 operands, tiled over M (and N)."""
    M, K = x.shape
    Nc = w.shape[1]
    tm = tm or _def_tm()
    tm_eff, m_pad = _mtile(M, tm)
    tn = _ntile(Nc)
    gn = Nc // tn
    xq = _pad_rows(x, m_pad)
    bias2 = bias.reshape(1, Nc).astype(jnp.float32)
    wmk = _const_spec if gn == 1 else pl.BlockSpec
    out = pl.pallas_call(
        functools.partial(_matmul_bias_act_kernel, apply_relu=apply_relu),
        out_shape=jax.ShapeDtypeStruct((m_pad, Nc), out_dtype),
        grid=(gn, m_pad // tm_eff),
        in_specs=[
            pl.BlockSpec((tm_eff, K), lambda j, i: (i, 0)),
            wmk((K, tn), lambda j, i: (0, j)),
            wmk((1, tn), lambda j, i: (0, j)),
        ],
        out_specs=pl.BlockSpec((tm_eff, tn), lambda j, i: (i, j)),
        compiler_params=_mosaic(2),
    )(xq, w, bias2)
    return out[:M] if m_pad != M else out


def fused_dual_matmul_bias_relu(a, wa, b, wb, bias, *, out_dtype, tm=None):
    M, Ka = a.shape
    Kb = b.shape[1]
    Nc = wa.shape[1]
    tm = tm or _def_tm()
    tm_eff, m_pad = _mtile(M, tm)
    tn = _ntile(Nc)
    gn = Nc // tn
    aq, bq = _pad_rows(a, m_pad), _pad_rows(b, m_pad)
    bias2 = bias.reshape(1, Nc).astype(jnp.float32)
    wmk = _const_spec if gn == 1 else pl.BlockSpec
    out = pl.pallas_call(
        _dual_matmul_bias_relu_kernel,
        out_shape=jax.ShapeDtypeStruct((m_pad, Nc), out_dtype),
        grid=(gn, m_pad // tm_eff),
        in_specs=[
            pl.BlockSpec((tm_eff, Ka), lambda j, i: (i, 0)),
            wmk((Ka, tn), lambda j, i: (0, j)),
            pl.BlockSpec((tm_eff, Kb), lambda j, i: (i, 0)),
            wmk((Kb, tn), lambda j, i: (0, j)),
            wmk((1, tn), lambda j, i: (0, j)),
        ],
        out_specs=pl.BlockSpec((tm_eff, tn), lambda j, i: (i, j)),
        compiler_params=_mosaic(2),
    )(aq, wa, bq, wb, bias2)
    return out[:M] if m_pad != M else out


def fused_matmul_bias_add_relu(a, wa, bias, res, *, out_dtype, tm=None):
    M, K = a.shape
    Nc = wa.shape[1]
    tm = tm or _def_tm()
    tm_eff, m_pad = _mtile(M, tm)
    tn = _ntile(Nc)
    gn = Nc // tn
    aq, rq = _pad_rows(a, m_pad), _pad_rows(res, m_pad)
    bias2 = bias.reshape(1, Nc).astype(jnp.float32)
    wmk = _const_spec if gn == 1 else pl.BlockSpec
    out = pl.pallas_call(
        _matmul_bias_add_relu_kernel,
        out_shape=jax.ShapeDtypeStruct((m_pad, Nc), out_dtype),
        grid=(gn, m_pad // tm_eff),
        in_specs=[
            pl.BlockSpec((tm_eff, K), lambda j, i: (i, 0)),
            wmk((K, tn), lambda j, i: (0, j)),
            wmk((1, tn), lambda j, i: (0, j)),
            pl.BlockSpec((tm_eff, tn), lambda j, i: (i, j)),
        ],
        out_specs=pl.BlockSpec((tm_eff, tn), lambda j, i: (i, j)),
        compiler_params=_mosaic(2),
    )(aq, wa, bias2, rq)
    return out[:M] if m_pad != M else out


# ----------------------------- direct 3x3 conv --------------------------------

def _build_stride1_slab(y, C):
    """Flattened, spatially padded slab for stride-1 taps."""
    N, H, W, _ = y.shape
    Hp, Wp = H + 2, W + 2
    L = _round_up(H * Wp, _SUB)                      # output rows per image
    Lx = _round_up(max(Hp * Wp, 2 * Wp + 2 + L), _SUB)
    xp = jnp.pad(y, ((0, 0), (1, 1), (1, 1), (0, 0))).reshape(N, Hp * Wp, C)
    xp = jnp.pad(xp, ((0, 0), (0, Lx - Hp * Wp), (0, 0))).reshape(N * Lx, C)
    starts = tuple(dy * Wp + dx for dy in range(3) for dx in range(3))
    return xp, starts, (H, W, Wp, L, Lx)


def _build_stride2_slab(y, C):
    """Space-to-batch parity slab: a stride-2 3x3 conv becomes 9 unit-shift taps
    over 4 parity sub-images (no 9x im2col amplification)."""
    N, H, W, _ = y.shape
    Hp, Wp = H + 2, W + 2
    Hp2, Wp2 = Hp + (Hp & 1), Wp + (Wp & 1)
    Hs, Ws = Hp2 // 2, Wp2 // 2
    Ho, Wo = (H - 1) // 2 + 1, (W - 1) // 2 + 1
    L = _round_up(Ho * Ws, _SUB)                     # output rows per image
    Ls = _round_up(max(Hs * Ws, Ws + 1 + L), _SUB)   # rows per parity section
    xp = jnp.pad(y, ((0, 0), (1, 1 + Hp2 - Hp), (1, 1 + Wp2 - Wp), (0, 0)))
    xp = xp.reshape(N, Hs, 2, Ws, 2, C).transpose(0, 2, 4, 1, 3, 5)
    xp = xp.reshape(N, 4, Hs * Ws, C)
    xp = jnp.pad(xp, ((0, 0), (0, 0), (0, Ls - Hs * Ws), (0, 0)))
    slab = xp.reshape(N * 4 * Ls, C)
    starts = tuple((2 * (dy % 2) + (dx % 2)) * Ls + (dy // 2) * Ws + (dx // 2)
                   for dy in range(3) for dx in range(3))
    return slab, starts, (Ho, Wo, Ws, L, 4 * Ls)


def conv3x3_bias_relu(y, w_packed, bias, stride, *, out_dtype):
    """3x3 / pad-1 conv + folded-BN bias + ReLU; direct kernel for stride 1 or 2."""
    N, H, W, C = y.shape
    Cout = w_packed.shape[-1]
    if stride == 1:
        slab, starts, (Ho, Wo, Wrow, L, Lx) = _build_stride1_slab(y, C)
    elif stride == 2:
        slab, starts, (Ho, Wo, Wrow, L, Lx) = _build_stride2_slab(y, C)
    else:
        return None                                   # caller falls back to im2col
    bias2 = bias.reshape(1, Cout).astype(jnp.float32)
    out = pl.pallas_call(
        functools.partial(_conv3x3_taps_kernel, starts=starts, C=C),
        out_shape=jax.ShapeDtypeStruct((N * L, Cout), out_dtype),
        grid=(N,),
        in_specs=[
            pl.BlockSpec((Lx, C), lambda n: (n, 0)),
            _const_spec(w_packed.shape, lambda n: (0, 0)),
            _const_spec((1, Cout), lambda n: (0, 0)),
        ],
        out_specs=pl.BlockSpec((L, Cout), lambda n: (n, 0)),
        compiler_params=_mosaic(1),
    )(slab, w_packed, bias2)
    out = out.reshape(N, L, Cout)[:, :Ho * Wrow, :]
    return out.reshape(N, Ho, Wrow, Cout)[:, :, :Wo, :]


# --------------------------------- JAX glue ------------------------------------

def _fold_bn(gamma, beta, mean, var, eps=1e-5):
    scale = gamma / jnp.sqrt(var + eps)
    return scale, beta - mean * scale


def _im2col(x, k, stride, pad):
    """NHWC -> (N*Ho*Wo, k*k*C) patches in (dy, dx, c) order (general-stride fallback)."""
    N, H, W, C = x.shape
    xp = jnp.pad(x, ((0, 0), (pad, pad), (pad, pad), (0, 0)))
    Ho = (H + 2 * pad - k) // stride + 1
    Wo = (W + 2 * pad - k) // stride + 1
    cols = [xp[:, dy:dy + stride * Ho:stride, dx:dx + stride * Wo:stride, :]
            for dy in range(k) for dx in range(k)]
    cols = jnp.concatenate(cols, axis=-1)
    return cols.reshape(N * Ho * Wo, k * k * C), (Ho, Wo)


def prepare_bottleneck(params, stride, expansion=4, dtype=jnp.bfloat16):
    """One-time weight packing: BN fold, transpose, 128-pad, bf16 cast, 9-tap repack."""
    planes = params["w1"].shape[0]
    cin = params["w1"].shape[1]
    cout = expansion * planes
    cin_p, p_p, e_p = (_round_up(cin, LANE), _round_up(planes, LANE),
                       _round_up(cout, LANE))

    s1, b1 = _fold_bn(*params["bn1"])
    w1 = params["w1"][:, :, 0, 0].T * s1[None, :]
    w1 = jnp.pad(w1, ((0, cin_p - cin), (0, p_p - planes))).astype(dtype)
    b1 = jnp.pad(b1, (0, p_p - planes))

    s2, b2 = _fold_bn(*params["bn2"])
    w2 = jnp.transpose(params["w2"], (2, 3, 1, 0)) * s2[None, None, None, :]
    w2 = jnp.pad(w2, ((0, 0), (0, 0), (0, p_p - planes), (0, p_p - planes)))
    w2 = w2.reshape(9 * p_p, p_p).astype(dtype)       # (dy, dx, cin)-major rows
    b2 = jnp.pad(b2, (0, p_p - planes))

    s3, b3 = _fold_bn(*params["bn3"])
    w3 = params["w3"][:, :, 0, 0].T * s3[None, :]
    w3 = jnp.pad(w3, ((0, p_p - planes), (0, e_p - cout))).astype(dtype)
    b3 = jnp.pad(b3, (0, e_p - cout))

    packed = dict(w1=w1, b1=b1, w2=w2, b2=b2, w3=w3, b3=b3,
                  stride=stride, cin=cin, cout=cout,
                  cin_p=cin_p, p_p=p_p, e_p=e_p)
    if stride != 1 or cin != cout:
        ss, bs = _fold_bn(*params["bns"])
        ws = params["ws"][:, :, 0, 0].T * ss[None, :]
        packed["ws"] = jnp.pad(ws, ((0, cin_p - cin), (0, e_p - cout))).astype(dtype)
        packed["b3s"] = b3 + jnp.pad(bs, (0, e_p - cout))
    return packed


def bottleneck_apply(x_nchw, pk):
    """Pallas-backed Bottleneck forward; NCHW in/out like the PyTorch module."""
    stride = pk["stride"]
    cdt = jnp.bfloat16
    cin_p, p_p, e_p, cout = pk["cin_p"], pk["p_p"], pk["e_p"], pk["cout"]

    # TODO(synk): NCHW->NHWC transpose + channel pad + bf16 cast is one XLA pass;
    # folding it into the conv1 kernel would need in-kernel transposed reads.
    x = jnp.transpose(x_nchw, (0, 2, 3, 1))
    N, H, W, cin = x.shape
    xpad = jnp.pad(x, ((0, 0), (0, 0), (0, 0), (0, cin_p - cin))).astype(cdt)

    # ---- conv1 (1x1) + bn1 + relu ----
    y1 = fused_matmul_bias(xpad.reshape(N * H * W, cin_p), pk["w1"], pk["b1"],
                           apply_relu=True, out_dtype=cdt).reshape(N, H, W, p_p)

    # ---- conv2 (3x3, stride, pad=1) + bn2 + relu ----
    if stride in (1, 2):
        y2 = conv3x3_bias_relu(y1, pk["w2"], pk["b2"], stride, out_dtype=cdt)
        Ho, Wo = y2.shape[1], y2.shape[2]
    else:
        # TODO(synk): strides other than 1/2 fall back to im2col (extra HBM traffic).
        cols, (Ho, Wo) = _im2col(y1, 3, stride, 1)
        y2 = fused_matmul_bias(cols, pk["w2"], pk["b2"], apply_relu=True,
                               out_dtype=cdt).reshape(N, Ho, Wo, p_p)
    m2 = N * Ho * Wo
    y2 = y2.reshape(m2, p_p)

    # ---- conv3 (1x1) + bn3 + shortcut + add + relu (single fused kernel) ----
    xs = xpad[:, ::stride, ::stride, :].reshape(m2, cin_p)
    if "ws" in pk:
        out = fused_dual_matmul_bias_relu(y2, pk["w3"], xs, pk["ws"], pk["b3s"],
                                          out_dtype=cdt)
    else:
        # identity shortcut (cin == expansion*planes, so cin_p == e_p)
        out = fused_matmul_bias_add_relu(y2, pk["w3"], pk["b3"], xs, out_dtype=cdt)

    # single fused slice + transpose + f32 cast (bf16 in HBM until here)
    out = out.reshape(N, Ho, Wo, e_p)[:, :, :, :cout]
    return jnp.transpose(out, (0, 3, 1, 2)).astype(jnp.float32)


def bottleneck_forward(x_nchw, params, stride=1):
    return bottleneck_apply(x_nchw, prepare_bottleneck(params, stride))


# ----------------------------- pure-JAX reference -------------------------------

def _ref_conv(x, w, stride=1, pad=0):
    return jax.lax.conv_general_dilated(
        x, w, (stride, stride), [(pad, pad), (pad, pad)],
        dimension_numbers=("NCHW", "OIHW", "NCHW"))


def _ref_bn(x, p, eps=1e-5):
    g, b, m, v = (t.reshape(1, -1, 1, 1) for t in p)
    return (x - m) / jnp.sqrt(v + eps) * g + b


def ref_forward(x, params, stride=1):
    expansion = 4
    planes = params["w1"].shape[0]
    out = jax.nn.relu(_ref_bn(_ref_conv(x, params["w1"]), params["bn1"]))
    out = jax.nn.relu(_ref_bn(_ref_conv(out, params["w2"], stride, 1), params["bn2"]))
    out = _ref_bn(_ref_conv(out, params["w3"]), params["bn3"])
    if stride != 1 or x.shape[1] != expansion * planes:
        sc = _ref_bn(_ref_conv(x, params["ws"], stride), params["bns"])
    else:
        sc = x
    return jax.nn.relu(out + sc)


# ----------------------------------- main ---------------------------------------

def _conv_w(key, cout, cin, kh, kw):
    fan = cin * kh * kw
    return jax.random.normal(key, (cout, cin, kh, kw), jnp.float32) / math.sqrt(fan)


def _bn_p(key, c):
    k1, k2, k3, k4 = jax.random.split(key, 4)
    return (jax.random.uniform(k1, (c,), jnp.float32, 0.5, 1.5),
            jax.random.normal(k2, (c,), jnp.float32) * 0.1,
            jax.random.normal(k3, (c,), jnp.float32) * 0.1,
            jax.random.uniform(k4, (c,), jnp.float32, 0.5, 1.5))


def _make_params(key, in_planes, planes, stride, expansion=4):
    ks = jax.random.split(key, 8)
    p = {"w1": _conv_w(ks[0], planes, in_planes, 1, 1), "bn1": _bn_p(ks[1], planes),
         "w2": _conv_w(ks[2], planes, planes, 3, 3), "bn2": _bn_p(ks[3], planes),
         "w3": _conv_w(ks[4], expansion * planes, planes, 1, 1),
         "bn3": _bn_p(ks[5], expansion * planes)}
    if stride != 1 or in_planes != expansion * planes:
        p["ws"] = _conv_w(ks[6], expansion * planes, in_planes, 1, 1)
        p["bns"] = _bn_p(ks[7], expansion * planes)
    return p


if __name__ == "__main__":
    expansion = 4
    N, H, W = 2, 8, 8
    configs = [
        dict(in_planes=16, planes=8, stride=1),   # projection shortcut, direct 3x3
        dict(in_planes=32, planes=8, stride=1),   # identity shortcut
        dict(in_planes=16, planes=8, stride=2),   # strided: direct parity 3x3 + projection
    ]
    root = jax.random.PRNGKey(0)
    for idx, cfg in enumerate(configs):
        kp, kx = jax.random.split(jax.random.fold_in(root, idx))
        params = _make_params(kp, cfg["in_planes"], cfg["planes"], cfg["stride"])
        x = jax.random.normal(kx, (N, cfg["in_planes"], H, W), jnp.float32)

        packed = prepare_bottleneck(params, stride=cfg["stride"])   # amortized once
        out = jax.block_until_ready(bottleneck_apply(x, packed))
        ref = jax.block_until_ready(ref_forward(x, params, stride=cfg["stride"]))

        exp_shape = (N, expansion * cfg["planes"], H // cfg["stride"], W // cfg["stride"])
        assert out.shape == ref.shape == exp_shape, (out.shape, ref.shape, exp_shape)
        err = float(jnp.max(jnp.abs(out - ref)))
        assert jnp.allclose(out, ref, atol=5e-2, rtol=5e-2), \
            f"mismatch cfg={cfg} max_abs_err={err}"

    print("KERNEL_OK")
</pallas_src>

<mosaic_0001>
module attributes {stable_mosaic.version = 11 : i64} {
  func.func @_k(%arg0: i32, %arg1: memref<8x128xf32, #tpu.memory_space<vmem>>, %arg2: memref<8x128xf32, #tpu.memory_space<vmem>>) attributes {dimension_semantics = [#tpu.dimension_semantics<arbitrary>], iteration_bounds = array<i64: 1>, scalar_prefetch = 0 : i64, scratch_operands = 0 : i64, tpu.core_type = #tpu.core_type<tc>, window_params = [{pipeline_mode = #tpu.pipeline_mode<synchronous>, transform_indices = @transform_0, window_bounds = array<i64: 8, 128>}, {pipeline_mode = #tpu.pipeline_mode<synchronous>, transform_indices = @transform_1, window_bounds = array<i64: 8, 128>}]} {
    %c0 = arith.constant 0 : index
    %c0_0 = arith.constant 0 : index
    %0 = vector.load %arg1[%c0, %c0_0] : memref<8x128xf32, #tpu.memory_space<vmem>>, vector<8x128xf32>
    %cst = arith.constant 1.000000e+00 : f32
    %1 = vector.broadcast %cst : f32 to vector<8x128xf32>
    %2 = arith.addf %0, %1 : vector<8x128xf32>
    %c0_1 = arith.constant 0 : index
    %c0_2 = arith.constant 0 : index
    %3 = vector.load %arg2[%c0_1, %c0_2] : memref<8x128xf32, #tpu.memory_space<vmem>>, vector<8x128xf32>
    tpu.vector_store %arg2[%c0_1, %c0_2], %2 {strides = array<i32>} : memref<8x128xf32, #tpu.memory_space<vmem>>, vector<8x128xf32>,
    return
  }
  func.func @transform_0(%arg0: i32) -> (i32, i32) {
    %c0_i32 = arith.constant 0 : i32
    %c0_i32_0 = arith.constant 0 : i32
    %c0_i32_1 = arith.constant 0 : i32
    return %c0_i32, %c0_i32_0 : i32, i32
  }
  func.func @transform_1(%arg0: i32) -> (i32, i32) {
    %c0_i32 = arith.constant 0 : i32
    %c0_i32_0 = arith.constant 0 : i32
    %c0_i32_1 = arith.constant 0 : i32
    return %c0_i32, %c0_i32_0 : i32, i32
  }
}

module attributes {stable_mosaic.version = 11 : i64} {
  func.func @_matmul_bias_act_kernel(%arg0: i32, %arg1: i32, %arg2: memref<64x128xbf16, #tpu.memory_space<vmem>>, %arg3: memref<128x128xbf16, #tpu.memory_space<vmem>>, %arg4: memref<1x128xf32, #tpu.memory_space<vmem>>, %arg5: memref<64x128xbf16, #tpu.memory_space<vmem>>) attributes {dimension_semantics = [#tpu.dimension_semantics<parallel>, #tpu.dimension_semantics<parallel>], iteration_bounds = array<i64: 1, 2>, scalar_prefetch = 0 : i64, scratch_operands = 0 : i64, tpu.core_type = #tpu.core_type<tc>, window_params = [{transform_indices = @transform_0, window_bounds = array<i64: 64, 128>}, {transform_indices = @transform_1, window_bounds = array<i64: 128, 128>}, {transform_indices = @transform_2, window_bounds = array<i64: 1, 128>}, {transform_indices = @transform_3, window_bounds = array<i64: 64, 128>}]} {
    %c0 = arith.constant 0 : index
    %c0_0 = arith.constant 0 : index
    %0 = vector.load %arg2[%c0, %c0_0] : memref<64x128xbf16, #tpu.memory_space<vmem>>, vector<64x128xbf16>
    %c0_1 = arith.constant 0 : index
    %c0_2 = arith.constant 0 : index
    %1 = vector.load %arg3[%c0_1, %c0_2] : memref<128x128xbf16, #tpu.memory_space<vmem>>, vector<128x128xbf16>
    %cst = arith.constant dense<0.000000e+00> : vector<64x128xf32>
    %2 = tpu.matmul %0, %1, %cst {dimension_numbers = #tpu.dot_dimension_numbers<[1], [0], [0], [1], [0, 0, 1, 1], [], []>} : vector<64x128xbf16>, vector<128x128xbf16>, vector<64x128xf32> -> vector<64x128xf32>
    %c0_3 = arith.constant 0 : index
    %c0_4 = arith.constant 0 : index
    %3 = vector.load %arg4[%c0_3, %c0_4] : memref<1x128xf32, #tpu.memory_space<vmem>>, vector<1x128xf32>
    %4 = vector.broadcast %3 : vector<1x128xf32> to vector<64x128xf32>
    %5 = arith.addf %2, %4 : vector<64x128xf32>
    %cst_5 = arith.constant 0.000000e+00 : f32
    %6 = vector.broadcast %cst_5 : f32 to vector<64x128xf32>
    %7 = arith.maximumf %5, %6 : vector<64x128xf32>
    %8 = arith.truncf %7 : vector<64x128xf32> to vector<64x128xbf16>
    %c0_6 = arith.constant 0 : index
    %c0_7 = arith.constant 0 : index
    %9 = vector.load %arg5[%c0_6, %c0_7] : memref<64x128xbf16, #tpu.memory_space<vmem>>, vector<64x128xbf16>
    tpu.vector_store %arg5[%c0_6, %c0_7], %8 {strides = array<i32>} : memref<64x128xbf16, #tpu.memory_space<vmem>>, vector<64x128xbf16>,
    return
  }
  func.func @transform_0(%arg0: i32, %arg1: i32) -> (i32, i32) {
    %c0_i32 = arith.constant 0 : i32
    %c0_i32_0 = arith.constant 0 : i32
    return %arg1, %c0_i32 : i32, i32
  }
  func.func @transform_1(%arg0: i32, %arg1: i32) -> (i32, i32) {
    %c0_i32 = arith.constant 0 : i32
    %c0_i32_0 = arith.constant 0 : i32
    return %c0_i32, %arg0 : i32, i32
  }
  func.func @transform_2(%arg0: i32, %arg1: i32) -> (i32, i32) {
    %c0_i32 = arith.constant 0 : i32
    %c0_i32_0 = arith.constant 0 : i32
    return %c0_i32, %arg0 : i32, i32
  }
  func.func @transform_3(%arg0: i32, %arg1: i32) -> (i32, i32) {
    %c0_i32 = arith.constant 0 : i32
    return %arg1, %arg0 : i32, i32
  }
}

</mosaic_0001>

<bundles_post_ra>
// kernel: tpu_custom_call.1
= control target key start
LH: loop header
LB: loop body
LE: loop exit
PB: predicated region body
PF: predicated region fallthrough
CT: control target
= control target key end

     0   :  { %6 = vsyncpa [#allocation3], 0  ;;  %s103_s0 = inlined_call_operand.hbm [shape: f32[8,128], index: 0, kind: input, shape index: {}]   ;;  %s104_s1 = inlined_call_operand.hbm [shape: f32[8,128], index: 1, kind: output, shape index: {}]  }
   0x1   :  { %7 = vsyncpa [#allocation4], 0  ;;  %s85_s6 = smov [#allocation2]  }
   0x2   :  { %s14_s7 = sshll.u32 %s85_s6, 4  ;;  %s15_s7 = int_to_ptr.vmem [resolvable:$true] %s14_s7 }
   0x3   :  { %s49_s8 = scalar_lea.vmem %s15_s7, 128  ;;  %p54_p1 = scmp.lt.s32.totalorder %s15_s7, %s15_s7 }
   0x4   :  { %p50_p0 = scmp.ne.s32.totalorder %s15_s7, %s49_s8  ;;  %p55_p2 = scmp.lt.s32.totalorder %s49_s8, %s49_s8 }
   0x6   :  { %p56_p3 = por %p55_p2, %p54_p1 }
   0x8   :  { %p57_p4 = pnand %p56_p3, %p50_p0 }
   0xa   :  { %60 = shalt.err (!%p57_p4)
}
   0xb   :  { %17 = dma.hbm_to_vmem [thread:$0]  %s103_s0, 128, %s15_s7, [#allocation3]  }
   0xc   :  { %81 = dma.done.wait [#allocation3], 128  }
   0xd   :  { %82 = vsyncadd [#allocation3], 4294967168  ;;  %s86_s11 = smov [#allocation5]   ;;  %v21_v0 = vld [vmem:[#allocation2] sm:$0xff] }
   0xe   :  { %s30_s12 = sshll.u32 %s86_s11, 4  ;;  %v22_v1 = vadd.f32 1.0, %v21_v0  ;;  %s31_s12 = int_to_ptr.vmem [resolvable:$true] %s30_s12 }
   0xf   :  { %s61_s13 = scalar_lea.vmem %s31_s12, 128  ;;  %p66_p6 = scmp.lt.s32.totalorder %s31_s12, %s31_s12 }
  0x10   :  { %23 = vst [vmem:[#allocation5] sm:$0xff] %v22_v1  ;;  %p62_p5 = scmp.ne.s32.totalorder %s31_s12, %s61_s13  ;;  %p67_p7 = scmp.lt.s32.totalorder %s61_s13, %s61_s13 }
  0x12   :  { %p68_p8 = por %p67_p7, %p66_p6 }
  0x14   :  { %p69_p9 = pnand %p68_p8, %p62_p5 }
  0x16   :  { %72 = shalt.err (!%p69_p9)
}
  0x17   :  { %33 = dma.vmem_to_hbm [thread:$0]  %s31_s12, 128, %s104_s1, [#allocation4]  }
  0x18   :  { %83 = dma.done.wait [#allocation4], 128  }
  0x19   :  { %84 = vsyncadd [#allocation4], 4294967168 }
  0x1a   :  { %37 = vsyncpa [#allocation3], 1 }
  0x1b   :  { %38 = vsyncpa [#allocation4], 1 }

// kernel: tpu_custom_call.1
= control target key start
LH: loop header
LB: loop body
LE: loop exit
PB: predicated region body
PF: predicated region fallthrough
CT: control target
= control target key end

     0   :  { %8 = vsyncpa [#allocation3], 0  ;;  %s1160_s0 = inlined_call_operand.hbm [shape: bf16[128,128], index: 0, kind: input, shape index: {}]   ;;  %s1161_s1 = inlined_call_operand.hbm [shape: bf16[128,128], index: 1, kind: input, shape index: {}]   ;;  %s1162_s2 = inlined_call_operand.vmem [shape: f32[1,128], index: 2, kind: input, shape index: {}]   ;;  %s1163_s3 = inlined_call_operand.hbm [shape: bf16[128,128], index: 3, kind: output, shape index: {}]  }
   0x1   :  { %10 = vsyncpa [#allocation3 + $0x1], 0 }
   0x2   :  { %11 = vsyncpa [#allocation6], 0 }
   0x3   :  { %12 = vsyncpa [#allocation4], 0 }
   0x4   :  { %14 = vsyncpa [#allocation4 + $0x1], 0  ;;  %s960_s12 = smov 0   ;;  %s962_s13 = smov 0  }
   0x5   :  { %s964_s14 = smov 0   ;;  %s966_s15 = smov 0  }
   0x6   :  { %s968_s16 = smov 0   ;;  %s970_s17 = smov 0  }
   0x7 LB: > { %s580_s18 = sadd.s32 4294967295, %s931_s17   ;;  %s581_s19 = sadd.s32 4294967294, %s931_s17   ;;  %s931_s17 = sphi %s970_s17, %s20_s17   ;;  %s927_s16 = sphi %s968_s16, %s1185_s16   ;;  %s923_s15 = sphi %s966_s15, %s1184_s15   ;;  %s919_s14 = sphi %s964_s14, %s1183_s14   ;;  %s915_s13 = sphi %s962_s13, %s1182_s13   ;;  %s911_s12 = sphi %s960_s12, %s1181_s12  }
   0x8   : > { %p52_p0 = scmp.ne.s32.totalorder %s915_s13, %s911_s12  ;;  %p994_p1 = scmp.eq.s32.totalorder %s580_s18, 0 }
   0x9   : > { %p998_p2 = scmp.eq.s32.totalorder %s580_s18, 1  ;;  %p136_p3 = scmp.eq.s32.totalorder %s581_s19, 1 }
   0xa   : > { %p1004_p4 = por %p994_p1, %p52_p0  ;;  %p582_p5 = scmp.ge.s32.totalorder %s931_s17, 1 }
   0xb   : > { %p1009_p6 = por %p136_p3, %p52_p0  ;;  %p143_p7 = scmp.lt.s32.totalorder %s931_s17, 3 }
   0xc   : > { %s1169_s22 = scalar_select %p1004_p4, 1, 0 }
   0xd   : > { %s1170_s23 = scalar_select %p1009_p6, 1, 0 }
   0xe   : > { %p1014_p8 = pnand %p582_p5, %p143_p7  ;;  %s933_s25 = smov [#allocation5]  }
   0xf   : > { %s157_s26 = sshll.u32 %s933_s25, 4  ;;  %s29_s28 = sadd.s32 1, %s927_s16  ;;  %s158_s26 = int_to_ptr.vmem [resolvable:$true] %s157_s26 }
  0x10   : > { %p712_p9 = pneg %p1014_p8  ;;  %s804_s29 = scalar_lea.vmem %s158_s26, 1024 }
  0x11   : > { %p805_p13 = scmp.ne.s32.totalorder %s158_s26, %s804_s29  ;;  %p812_p5 = scmp.lt.s32.totalorder %s158_s26, %s158_s26 }
  0x12   : > { %p1023_p11 = pnand %p712_p9, %p994_p1  ;;  %p813_p7 = scmp.lt.s32.totalorder %s804_s29, %s804_s29 }
  0x14   : > { %p795_p12 = pneg %p1023_p11  ;;  %p814_p6 = por %p813_p7, %p812_p5 }
  0x16   : > { %p807_p0 = pnand %p805_p13, %p795_p12 }
  0x18   : > { %p808_p3 = pneg %p807_p0 }
  0x1a   : > { %p815_p4 = pnand %p814_p6, %p808_p3 }
  0x1c   : > { %818 = shalt.err (!%p815_p4)
}
  0x1d   : > { %s1165_s30 = smov 64   ;;  %s1166_s4 = smov 4  }
  0x1e   : > { %715 = dma.hbm_to_vmem [thread:$0]  (!%p1023_p11), %s1161_s1, 1024, %s158_s26, [#allocation6], %s1165_s30, %s1165_s30, %s1166_s4  }
  0x1f   : > { %p30_p4 = scmp.ge.s32.totalorder %s29_s28, 2  ;;  %s39_s7 = sadd.s32 1, %s919_s14 }
  0x20   : > { %p46_p6 = scmp.ne.s32.totalorder %s919_s14, %s915_s13  ;;  %p47_p9 = scmp.eq.s32.totalorder %s931_s17, 0 }
  0x21   : > { %s1187_s28 = smov (%p30_p4, %s29_s28), 0  ;;  %p725_p0 = scmp.lt.s32.totalorder %s931_s17, 2 }
  0x22   : > { %p1044_p12 = por %p47_p9, %p46_p6  ;;  %p1050_p13 = por %p998_p2, %p46_p6 }
  0x23   : > { %s36_s10 = ssub.s32 %s927_s16, %s1187_s28  ;;  %s177_s11 = sand.u32 1, %s919_s14  }
  0x24   : > { %p37_p11 = scmp.eq.s32.totalorder %s36_s10, 0  ;;  %s586_s18 = sshll.u32 %s177_s11, 5 }
  0x25   : > { %s619_s25 = sshll.u32 %s927_s16, 9  ;;  %s181_s5 = scalar_lea.vmem [#allocation2], %s586_s18 }
  0x26   : > { %s1059_s19 = scalar_select %p37_p11, %s919_s14, %s39_s7  }
  0x27   : > { %s187_s29 = scalar_lea.hbm %s1160_s0, %s619_s25  ;;  %s188_s6 = sshll.u32 %s181_s5, 4  ;;  %s189_s6 = int_to_ptr.vmem [resolvable:$true] %s188_s6 }
  0x28   : > { %p1067_p2 = pnand %p725_p0, %p1044_p12  ;;  %s178_s30 = scalar_lea.sflag [#allocation3], %s177_s11 }
  0x29   : > { %s832_s10 = scalar_lea.vmem %s189_s6, 512  ;;  %s936_s7 = smov [#allocation2]  }
  0x2a   : > { %p821_p3 = pneg %p1067_p2  ;;  %p833_p5 = scmp.ne.s32.totalorder %s189_s6, %s832_s10 }
  0x2b   : > { %s837_s4 = sshll.u32 %s936_s7, 4  ;;  %s838_s4 = int_to_ptr.vmem [resolvable:$false] %s837_s4 }
  0x2c   : > { %p835_p7 = pnand %p833_p5, %p821_p3  ;;  %s839_s25 = scalar_lea.vmem %s838_s4, 1024 }
  0x2d   : > { %p840_p6 = scmp.lt.s32.totalorder %s189_s6, %s838_s4  ;;  %p841_p9 = scmp.lt.s32.totalorder %s839_s25, %s832_s10 }
  0x2e   : > { %p836_p4 = pneg %p835_p7 }
  0x2f   : > { %p842_p11 = por %p841_p9, %p840_p6 }
  0x31   : > { %p843_p10 = pnand %p842_p11, %p836_p4 }
  0x33   : > { %846 = shalt.err (!%p843_p10)
}
  0x34   : > { %s1176_s8 = smov 4   ;;  %s1177_s18 = smov 64  }
  0x35   : > { %719 = dma.hbm_to_vmem [thread:$0]  (!%p1067_p2), %s187_s29, 512, %s189_s6, %s178_s30, %s1177_s18, %s1177_s18, %s1176_s8  }
  0x36   : > { %200 = sbr.rel (%p1014_p8) target bundleno = 314 (0x13a), region = 32  ;;  %s1081_s11 = sand.u32 (!%p1014_p8), 1, %s915_s13  }
  0x37   : > { %s590_s4 = sshll.u32 (!%p1014_p8), %s1081_s11, 5  ;;  %s203_s26 = scalar_lea.sflag (!%p1014_p8), [#allocation3], %s1081_s11 }
  0x38   : > { %s1087_s27 = scalar_lea.vmem (!%p1014_p8), [#allocation2], %s590_s4  ;;  %p1178_p10 = scmp.ne.s32.totalorder (!%p1014_p8), %s1169_s22, 0 }
  0x3b   : > { %898 = dma.done.wait (%p1178_p10), %s203_s26, 512  }
  0x3c   : > { %900 = vsyncadd (%p1178_p10), %s203_s26, 4294966784 }
  0x3d   : > { %902 = dma.done.wait (%p994_p1), [#allocation6], 1024  }
  0x3e   : > { %904 = vsyncadd (%p994_p1), [#allocation6], 4294966272  ;;  %v781_v0 = vld [vmem:[#allocation5 + $0x38] sm:$0xff]   ;;  %v782_v1 = vld [vmem:[#allocation5 + $0x30] sm:$0xff]   ;;  %s235_s24 = scalar_lea.vmem [#allocation7], %s590_s4  ;;  %s628_s29 = sshll.u32 %s923_s15, 9 }
  0x3f   : > { %664 = vmatprep.subr.bf16.mxu0 %v781_v0  ;;  %688 = vmatprep.subr.bf16.mxu1 %v781_v0  ;;  %v783_v2 = vld [vmem:[#allocation5 + $0x28] sm:$0xff]   ;;  %v784_v3 = vld [vmem:[#allocation5 + $0x20] sm:$0xff]   ;;  %v790_v5 = vld [vmem:[%s1087_s27 + $0x10] sm:$0xff]   ;;  %s473_s30 = sshll.u32 %s235_s24, 4  ;;  %s1112_s21 = scalar_lea.hbm %s1163_s3, %s628_s29  ;;  %s1107_s30 = int_to_ptr.vmem [resolvable:$true] %s473_s30 }
  0x40   : > { %665 = vmatpush3.bf16.msra.mxu0 %v781_v0  ;;  %696 = vmatpush3.bf16.msra.mxu1 %v781_v0  ;;  %v789_v4 = vld [vmem:[%s1087_s27] sm:$0xff]   ;;  %v785_v6 = vld [vmem:[#allocation5 + $0x18] sm:$0xff]   ;;  %v786_v7 = vld [vmem:[#allocation5 + $0x10] sm:$0xff]   ;;  %s459_s15 = scalar_lea.sflag [#allocation4], %s1081_s11  ;;  %s847_s10 = scalar_lea.vmem %s1107_s30, 512 }
  0x41   : > { %666 = vmatprep.subr.bf16.mxu0 %v782_v1  ;;  %689 = vmatprep.subr.bf16.mxu1 %v782_v1  ;;  %v787_v8 = vld [vmem:[#allocation5 + $0x8] sm:$0xff]   ;;  %v788_v9 = vld [vmem:[#allocation5] sm:$0xff]   ;;  %v792_v11 = vld [vmem:[%s1087_s27 + $0x18] sm:$0xff]   ;;  %p848_p1 = scmp.ne.s32.totalorder %s1107_s30, %s847_s10  ;;  %s937_s7 = smov [#allocation7]  }
  0x42   : > { %680 = vmatprep.mubr.bf16.mxu0 %v789_v4  ;;  %684 = vmatprep.mubr.bf16.mxu1 %v790_v5  ;;  %v791_v10 = vld [vmem:[%s1087_s27 + $0x8] sm:$0xff]   ;;  %v593_v12 = vld [vmem:[%s1162_s2] ss:$0 sm:$0xff]  ;;  %s851_s25 = sshll.u32 %s937_s7, 4  ;;  %s852_s25 = int_to_ptr.vmem [resolvable:$false] %s851_s25 }
  0x43   : > { %p849_p8 = pnand %p848_p1, %p1050_p13  ;;  %s853_s8 = scalar_lea.vmem %s852_s25, 1024 }
  0x44   : > { %667 = vmatpush3.bf16.msra.mxu0 %v782_v1  ;;  %697 = vmatpush3.bf16.msra.mxu1 %v782_v1  ;;  %p854_p0 = scmp.lt.s32.totalorder %s1107_s30, %s852_s25  ;;  %p855_p2 = scmp.lt.s32.totalorder %s853_s8, %s847_s10 }
  0x45   : > { %668 = vmatprep.subr.bf16.mxu0 %v783_v2  ;;  %690 = vmatprep.subr.bf16.mxu1 %v783_v2  ;;  %p850_p12 = pneg %p849_p8 }
  0x46   : > { %p856_p3 = por %p855_p2, %p854_p0 }
  0x48   : > { %669 = vmatpush3.bf16.msra.mxu0 %v783_v2  ;;  %698 = vmatpush3.bf16.msra.mxu1 %v783_v2  ;;  %p857_p5 = pnand %p856_p3, %p850_p12 }
  0x49   : > { %670 = vmatprep.subr.bf16.mxu0 %v784_v3  ;;  %691 = vmatprep.subr.bf16.mxu1 %v784_v3 }
  0x4c   : > { %671 = vmatpush3.bf16.msra.mxu0 %v784_v3  ;;  %699 = vmatpush3.bf16.msra.mxu1 %v784_v3 }
  0x4d   : > { %672 = vmatprep.subr.bf16.mxu0 %v785_v6  ;;  %692 = vmatprep.subr.bf16.mxu1 %v785_v6 }
  0x50   : > { %673 = vmatpush3.bf16.msra.mxu0 %v785_v6  ;;  %700 = vmatpush3.bf16.msra.mxu1 %v785_v6 }
  0x51   : > { %674 = vmatprep.subr.bf16.mxu0 %v786_v7  ;;  %693 = vmatprep.subr.bf16.mxu1 %v786_v7 }
  0x54   : > { %675 = vmatpush3.bf16.msra.mxu0 %v786_v7  ;;  %701 = vmatpush3.bf16.msra.mxu1 %v786_v7 }
  0x55   : > { %676 = vmatprep.subr.bf16.mxu0 %v787_v8  ;;  %694 = vmatprep.subr.bf16.mxu1 %v787_v8 }
  0x58   : > { %677 = vmatpush3.bf16.msra.mxu0 %v787_v8  ;;  %702 = vmatpush3.bf16.msra.mxu1 %v787_v8 }
  0x59   : > { %678 = vmatprep.subr.bf16.mxu0 %v788_v9  ;;  %695 = vmatprep.subr.bf16.mxu1 %v788_v9 }
  0x5c   : > { %679 = vmatpush3.bf16.msra.mxu0 %v788_v9  ;;  %703 = vmatpush3.bf16.msra.mxu1 %v788_v9 }
  0x5f   : > { %681 = vmatmul.mubr.bf16.vlgmr.msra.gmra.mxu0 %v791_v10  ;;  %685 = vmatmul.mubr.bf16.vlgmr.msra.gmra.mxu1 %v792_v11 }
 0x11f   : > { %v682_v13 = vpop.f32.mrf.mxu0  ;;  %v686_v14 = vpop.f32.mrf.mxu1 }
 0x120   : > { %v388_v15 = vadd.f32 %v682_v13, %v593_v12  ;;  %v404_v16 = vadd.f32 %v686_v14, %v593_v12 }
 0x121   : > { %v379_v17 = vpop.f32.mrf.mxu0  ;;  %v395_v18 = vpop.f32.mrf.mxu1 }
 0x122   : > { %v380_v19 = vadd.f32 %v593_v12, %v379_v17  ;;  %v396_v20 = vadd.f32 %v593_v12, %v395_v18  ;;  %v412_v25 = vmax.f32 %v388_v15, 0.0  ;;  %v416_v26 = vmax.f32 %v404_v16, 0.0 }
 0x123   : > { %v683_v21 = vpop.f32.mrf.mxu0  ;;  %v687_v22 = vpop.f32.mrf.mxu1 }
 0x124   : > { %v391_v23 = vadd.f32 %v683_v21, %v593_v12  ;;  %v407_v24 = vadd.f32 %v687_v22, %v593_v12  ;;  %v410_v33 = vmax.f32 %v380_v19, 0.0  ;;  %v414_v34 = vmax.f32 %v396_v20, 0.0 }
 0x125   : > { %v382_v27 = vpop.f32.mrf.mxu0  ;;  %v398_v28 = vpop.f32.mrf.mxu1 }
 0x126   : > { %v413_v29 = vmax.f32 %v391_v23, 0.0  ;;  %v417_v30 = vmax.f32 %v407_v24, 0.0  ;;  %v383_v31 = vadd.f32 %v593_v12, %v382_v27  ;;  %v399_v32 = vadd.f32 %v593_v12, %v398_v28 }
 0x128   : > { %v637_v35 = vpack.c.bf16 %v413_v29, %v412_v25  ;;  %v647_v36 = vpack.c.bf16 %v417_v30, %v416_v26  ;;  %v411_v37 = vmax.f32 %v383_v31, 0.0  ;;  %v415_v38 = vmax.f32 %v399_v32, 0.0 }
 0x12a   : > { %649 = vst [vmem:[%s235_s24 + $0x8] sm:$0xff] %v637_v35   ;;  %651 = vst [vmem:[%s235_s24 + $0x18] sm:$0xff] %v647_v36   ;;  %v632_v39 = vpack.c.bf16 %v411_v37, %v410_v33  ;;  %v642_v40 = vpack.c.bf16 %v415_v38, %v414_v34 }
 0x12c   : > { %633 = vst [vmem:[%s235_s24] sm:$0xff] %v632_v39   ;;  %650 = vst [vmem:[%s235_s24 + $0x10] sm:$0xff] %v642_v40  }
 0x12d   : > { %860 = shalt.err (!%p857_p5)
}
 0x12e   : > { %s861_s18 = scalar_lea.hbm %s1112_s21, 512  ;;  %s865_s27 = scalar_lea.hbm %s1163_s3, 1024 }
 0x12f   : > { %p862_p7 = scmp.ne.s32.totalorder %s1112_s21, %s861_s18  ;;  %p866_p9 = scmp.lt.s32.totalorder %s1112_s21, %s1163_s3 }
 0x130   : > { %p867_p11 = scmp.lt.s32.totalorder %s865_s27, %s861_s18 }
 0x131   : > { %p863_p4 = pnand %p862_p7, %p1050_p13 }
 0x132   : > { %p868_p10 = por %p867_p11, %p866_p9 }
 0x133   : > { %p864_p6 = pneg %p863_p4 }
 0x135   : > { %p869_p1 = pnand %p868_p10, %p864_p6 }
 0x137   : > { %872 = shalt.err (!%p869_p1)
}
 0x138   : > { %s938_s24 = smov 64   ;;  %s939_s29 = smov 4  }
 0x139   : > { %710 = dma.vmem_to_hbm [thread:$0]  (%p1050_p13), %s1107_s30, 512, %s1112_s21, %s459_s15, %s938_s24, %s938_s24, %s939_s29  }
 0x13a PF: > { %s488_s5 = sand.u32 1, %s911_s12   ;;  %p1179_p8 = scmp.ne.s32.totalorder %s1170_s23, 0 }
 0x13b   : > { %p1180_p12 = scmp.ge.s32.totalorder %s931_s17, 2  ;;  %s489_s6 = scalar_lea.sflag [#allocation4], %s488_s5 }
 0x13d   : > { %p721_p0 = pnand %p1180_p12, %p1179_p8 }
 0x13f   : > { %p722_p2 = pneg %p721_p0 }
 0x141   : > { %906 = dma.done.wait (%p722_p2), %s489_s6, 512  }
 0x142   : > { %908 = vsyncadd (%p722_p2), %s489_s6, 4294966784  ;;  %s20_s17 = sadd.s32 1, %s931_s17   ;;  %s1181_s12 = smov %s915_s13 }
 0x143   : > { %p17_p3 = scmp.ge.s32.totalorder %s20_s17, 4   ;;  %s1182_s13 = smov %s919_s14 }
 0x144   : > { %s1183_s14 = smov %s1059_s19  ;;  %s1184_s15 = smov %s927_s16 }
 0x145   : > { %s1185_s16 = smov %s1187_s28  ;;  %19 = sbr.rel (!%p17_p3) target bundleno = 7 (0x7), region = 85 }
 0x14a   :  { %494 = vsyncpa [#allocation3], 1 }
 0x14b   :  { %496 = vsyncpa [#allocation3 + $0x1], 1 }
 0x14c   :  { %497 = vsyncpa [#allocation6], 1 }
 0x14d   :  { %498 = vsyncpa [#allocation4], 1 }
 0x14e   :  { %500 = vsyncpa [#allocation4 + $0x1], 1 }

</bundles_post_ra>
